<compile_context>
chip_gen: v7x
topology: tpu7x:2x2x1
jax: 0.10.0
libtpu: 0.0.40
codegen_flags: <defaults>
</compile_context>

<pallas_src>
import functools

import jax
import jax.numpy as jnp
import numpy as np
from jax import lax
from jax.experimental import pallas as pl
from jax.experimental.pallas import tpu as pltpu


# ----------------------------------------------------------------------------- kernel
def _upsample_kernel(x_ref, halo_ref, w3_ref, out_ref):
    # x_ref   : (1, TT, C_in)      current time tile, channels-last
    # halo_ref: (1, 1, 2, C_in)    [x[t0-1], x[t0+TT]] for this tile (zeros at sequence ends)
    # w3_ref  : (3*C_in, s*C_out)  fused phase weights [cur ; prev ; next] (VMEM-resident,
    #                              constant index_map so the pipeline never refetches it)
    # out_ref : (1, TT, s*C_out)
    tt = x_ref.shape[1]

    x_cur = x_ref[0]                           # (TT, C_in)  x[t]
    left = halo_ref[0, 0, 0:1, :]              # (1, C_in)   x[t0-1]   (zero at q=0)
    right = halo_ref[0, 0, 1:2, :]             # (1, C_in)   x[t0+TT]  (zero at q=T-1)

    # Shift-by-one views of the tile, with the halo frames patched in at the boundaries.
    x_prev = jnp.concatenate([left, x_cur[: tt - 1, :]], axis=0)    # x[t-1]
    x_next = jnp.concatenate([x_cur[1:, :], right], axis=0)         # x[t+1]

    # One wide operand -> one MXU matmul of depth 3*C_in (instead of three depth-C_in dots).
    x_cat = jnp.concatenate([x_cur, x_prev, x_next], axis=1)        # (TT, 3*C_in)
    y = jnp.dot(x_cat, w3_ref[...], preferred_element_type=jnp.float32)

    # Single lane-dense store of the whole tile (no masked partial-lane stores).
    out_ref[0] = y.astype(out_ref.dtype)


# ----------------------------------------------------------------------------- wrapper
def _choose_time_tile(T, max_tile=1024):
    """Largest multiple-of-16 divisor of T that is <= max_tile (or T itself if small)."""
    if T <= max_tile:
        return T
    start = max_tile - (max_tile % 16)
    for tt in range(start, 0, -16):
        if T % tt == 0:
            return tt
    return T  # fallback: single tile


def upsample_net_forward(x_nct, weight, upsample_factor, *, time_tile=None,
                         compute_dtype=jnp.bfloat16, out_dtype=None,
                         channels_last=False):
    """x_nct: (N, C_in, T). weight: (C_in, C_out, 2*upsample_factor) (already spectral-normed).

    Returns (N, C_out, T*s) if channels_last=False (PyTorch layout, one extra output
    transpose pass), else (N, T*s, C_out) with zero extra HBM passes over the output.
    """
    s = upsample_factor
    assert s % 2 == 0, "kernel decomposition assumes even upsample_factor"
    # TODO(synk): odd upsample_factor (padding=(s-1)//2) needs a slightly different phase split.
    N, C_in, T = x_nct.shape
    C_out = weight.shape[1]
    K = weight.shape[2]
    assert K == 2 * s
    if out_dtype is None:
        out_dtype = compute_dtype

    tt = _choose_time_tile(T) if time_tile is None else time_tile
    assert T % tt == 0, f"time_tile {tt} must divide T={T}"
    n_t = T // tt

    # --- fused weight W3 (3*C_in, s*C_out); column index = r*C_out + c (r-major) so the
    #     kernel output reshapes to (T*s, C_out) for free ---
    w = weight.astype(jnp.float32)
    wa = jnp.transpose(w[:, :, s // 2: 3 * s // 2], (0, 2, 1)).reshape(C_in, s * C_out)
    wp = jnp.transpose(w[:, :, 3 * s // 2: 2 * s], (0, 2, 1)).reshape(C_in, (s // 2) * C_out)
    wn = jnp.transpose(w[:, :, 0: s // 2], (0, 2, 1)).reshape(C_in, (s // 2) * C_out)
    zhalf = jnp.zeros((C_in, (s // 2) * C_out), jnp.float32)
    w3 = jnp.concatenate([
        wa,                                        # x[t]   rows
        jnp.concatenate([wp, zhalf], axis=1),      # x[t-1] rows (only phases r <  s/2)
        jnp.concatenate([zhalf, wn], axis=1),      # x[t+1] rows (only phases r >= s/2)
    ], axis=0).astype(compute_dtype)

    # --- input: channels-last + (optional) bf16 cast, fused by XLA into one small pass ---
    x_tlc = jnp.transpose(x_nct, (0, 2, 1)).astype(compute_dtype)   # (N, T, C_in)

    # --- per-tile halo frames (tiny): left = x[t0-1], right = x[t0+TT], zeros at ends ---
    zcol = jnp.zeros((N, 1, C_in), compute_dtype)
    left = jnp.concatenate([zcol, x_tlc[:, tt - 1::tt, :][:, :n_t - 1, :]], axis=1)  # (N, nT, C_in)
    right = jnp.concatenate([x_tlc[:, tt::tt, :], zcol], axis=1)                     # (N, nT, C_in)
    halo = jnp.stack([left, right], axis=2)                                          # (N, nT, 2, C_in)

    out = pl.pallas_call(
        _upsample_kernel,
        out_shape=jax.ShapeDtypeStruct((N, T, s * C_out), out_dtype),
        grid_spec=pltpu.PrefetchScalarGridSpec(
            num_scalar_prefetch=0,
            grid=(N, n_t),
            in_specs=[
                pl.BlockSpec((1, tt, C_in), lambda n, t: (n, t, 0)),
                pl.BlockSpec((1, 1, 2, C_in), lambda n, t: (n, t, 0, 0)),
                # Constant index_map: W3 stays VMEM-resident across the whole grid.
                # TODO(synk): pipeline_mode=pl.Buffered(1) here would drop the redundant
                #             second weight buffer (minor VMEM saving, mostly for v7x).
                pl.BlockSpec((3 * C_in, s * C_out), lambda n, t: (0, 0)),
            ],
            out_specs=pl.BlockSpec((1, tt, s * C_out), lambda n, t: (n, t, 0)),
        ),
        compiler_params=pltpu.CompilerParams(
            dimension_semantics=("parallel", "parallel")),
    )(x_tlc, halo, w3)

    # (N, T, s*C_out) -> (N, T*s, C_out): pure reshape, no data movement.
    out = out.reshape(N, T * s, C_out)
    if channels_last:
        return out
    # PyTorch NCL layout: one extra pass over the (large) output; skip via channels_last=True.
    return jnp.transpose(out, (0, 2, 1))


# ----------------------------------------------------------------------------- params
def make_params(key, input_size, output_size, upsample_factor):
    """Deterministic orthogonal init + spectral normalization (as in the module)."""
    K = 2 * upsample_factor
    a = jax.random.normal(key, (output_size * K, input_size), dtype=jnp.float32)
    q, _ = jnp.linalg.qr(a)                      # (C_out*K, C_in), orthonormal columns
    w_flat = q.T                                 # (C_in, C_out*K), orthonormal rows
    w_orig = w_flat.reshape(input_size, output_size, K)

    # spectral norm via power iteration on the (C_in, C_out*K) matrix
    w_mat = w_orig.reshape(input_size, -1)
    u = jax.random.normal(jax.random.fold_in(key, 1), (input_size,), dtype=jnp.float32)
    u = u / (jnp.linalg.norm(u) + 1e-12)
    for _ in range(30):
        v = w_mat.T @ u
        v = v / (jnp.linalg.norm(v) + 1e-12)
        u = w_mat @ v
        u = u / (jnp.linalg.norm(u) + 1e-12)
    sigma = u @ (w_mat @ v)
    return w_orig / sigma


# ----------------------------------------------------------------------------- reference
def reference_forward(x_nct, weight, upsample_factor):
    s = upsample_factor
    K = weight.shape[2]
    pad = s // 2
    # transposed conv = dilated conv with flipped / transposed kernel
    rhs = jnp.flip(jnp.transpose(weight, (1, 0, 2)), axis=-1)      # (C_out, C_in, K)
    y = lax.conv_general_dilated(
        x_nct, rhs,
        window_strides=(1,),
        padding=[(K - 1 - pad, K - 1 - pad)],
        lhs_dilation=(s,),
        dimension_numbers=("NCH", "OIH", "NCH"),
    )
    T = x_nct.shape[-1]
    return y[:, :, : T * s]


# ----------------------------------------------------------------------------- main
if __name__ == "__main__":
    input_size = 32      # C_in
    output_size = 16     # C_out
    upsample_factor = 4  # stride s, kernel 2s=8, padding s//2=2
    N, T = 2, 32
    TT = 16              # force 2 time tiles so the halo/pipelining path is exercised

    key = jax.random.PRNGKey(0)
    k_w, k_x = jax.random.split(key)
    weight = make_params(k_w, input_size, output_size, upsample_factor)
    x = jax.random.normal(k_x, (N, input_size, T), dtype=jnp.float32)

    ref = reference_forward(x, weight, upsample_factor)

    # 1) Exact-precision path, PyTorch (N, C_out, T*s) layout (drop-in semantics).
    fwd_f32 = jax.jit(functools.partial(
        upsample_net_forward, upsample_factor=upsample_factor, time_tile=TT,
        compute_dtype=jnp.float32, channels_last=False))
    out_f32 = jax.block_until_ready(fwd_f32(x, weight))
    assert out_f32.shape == (N, output_size, T * upsample_factor), out_f32.shape
    np.testing.assert_allclose(np.asarray(out_f32), np.asarray(ref), rtol=1e-4, atol=1e-5)

    # 2) Bandwidth-optimized path: bf16 I/O + channels-last output (no NCL transpose pass).
    fwd_bf16 = jax.jit(functools.partial(
        upsample_net_forward, upsample_factor=upsample_factor, time_tile=TT,
        compute_dtype=jnp.bfloat16, channels_last=True))
    out_bf16 = jax.block_until_ready(fwd_bf16(x, weight))
    assert out_bf16.shape == (N, T * upsample_factor, output_size), out_bf16.shape
    ref_cl = jnp.transpose(ref, (0, 2, 1))
    np.testing.assert_allclose(np.asarray(out_bf16.astype(jnp.float32)),
                               np.asarray(ref_cl), rtol=3e-2, atol=3e-2)

    print("KERNEL_OK")
</pallas_src>

<mosaic_0001>
module attributes {stable_mosaic.version = 11 : i64} {
  func.func @_upsample_kernel(%arg0: i32, %arg1: i32, %arg2: memref<1x16x32xf32, #tpu.memory_space<vmem>>, %arg3: memref<1x1x2x32xf32, #tpu.memory_space<vmem>>, %arg4: memref<96x64xf32, #tpu.memory_space<vmem>>, %arg5: memref<1x16x64xf32, #tpu.memory_space<vmem>>) attributes {dimension_semantics = [#tpu.dimension_semantics<parallel>, #tpu.dimension_semantics<parallel>], iteration_bounds = array<i64: 2, 2>, scalar_prefetch = 0 : i64, scratch_operands = 0 : i64, tpu.core_type = #tpu.core_type<tc>, window_params = [{transform_indices = @transform_0, window_bounds = array<i64: 1, 16, 32>}, {transform_indices = @transform_1, window_bounds = array<i64: 1, 1, 2, 32>}, {pipeline_mode = #tpu.pipeline_mode<synchronous>, transform_indices = @transform_2, window_bounds = array<i64: 96, 64>}, {transform_indices = @transform_3, window_bounds = array<i64: 1, 16, 64>}]} {
    %c0 = arith.constant 0 : index
    %c0_0 = arith.constant 0 : index
    %c0_1 = arith.constant 0 : index
    %0 = vector.load %arg2[%c0, %c0_0, %c0_1] : memref<1x16x32xf32, #tpu.memory_space<vmem>>, vector<1x16x32xf32>
    %1 = vector.shape_cast %0 : vector<1x16x32xf32> to vector<16x32xf32>
    %c0_2 = arith.constant 0 : index
    %c0_3 = arith.constant 0 : index
    %c0_4 = arith.constant 0 : index
    %c0_5 = arith.constant 0 : index
    %2 = vector.load %arg3[%c0_2, %c0_3, %c0_4, %c0_5] : memref<1x1x2x32xf32, #tpu.memory_space<vmem>>, vector<1x1x1x32xf32>
    %3 = vector.shape_cast %2 : vector<1x1x1x32xf32> to vector<1x32xf32>
    %c0_6 = arith.constant 0 : index
    %c0_7 = arith.constant 0 : index
    %c1 = arith.constant 1 : index
    %c0_8 = arith.constant 0 : index
    %4 = vector.load %arg3[%c0_6, %c0_7, %c1, %c0_8] : memref<1x1x2x32xf32, #tpu.memory_space<vmem>>, vector<1x1x1x32xf32>
    %5 = vector.shape_cast %4 : vector<1x1x1x32xf32> to vector<1x32xf32>
    %6 = vector.extract_strided_slice %1 {offsets = [0, 0], sizes = [15, 32], strides = [1, 1]} : vector<16x32xf32> to vector<15x32xf32>
    %7 = tpu.concatenate %3, %6 in 0 : vector<1x32xf32>, vector<15x32xf32> -> vector<16x32xf32>
    %8 = vector.extract_strided_slice %1 {offsets = [1, 0], sizes = [15, 32], strides = [1, 1]} : vector<16x32xf32> to vector<15x32xf32>
    %9 = tpu.concatenate %8, %5 in 0 : vector<15x32xf32>, vector<1x32xf32> -> vector<16x32xf32>
    %10 = tpu.concatenate %1, %7, %9 in 1 : vector<16x32xf32>, vector<16x32xf32>, vector<16x32xf32> -> vector<16x96xf32>
    %c0_9 = arith.constant 0 : index
    %c0_10 = arith.constant 0 : index
    %11 = vector.load %arg4[%c0_9, %c0_10] : memref<96x64xf32, #tpu.memory_space<vmem>>, vector<96x64xf32>
    %cst = arith.constant dense<0.000000e+00> : vector<16x64xf32>
    %12 = tpu.matmul %10, %11, %cst {dimension_numbers = #tpu.dot_dimension_numbers<[1], [0], [0], [1], [0, 0, 1, 1], [], []>} : vector<16x96xf32>, vector<96x64xf32>, vector<16x64xf32> -> vector<16x64xf32>
    %c0_11 = arith.constant 0 : index
    %c0_12 = arith.constant 0 : index
    %c0_13 = arith.constant 0 : index
    %13 = vector.load %arg5[%c0_11, %c0_12, %c0_13] : memref<1x16x64xf32, #tpu.memory_space<vmem>>, vector<1x16x64xf32>
    %14 = vector.shape_cast %13 : vector<1x16x64xf32> to vector<16x64xf32>
    %15 = vector.shape_cast %12 : vector<16x64xf32> to vector<1x16x64xf32>
    tpu.vector_store %arg5[%c0_11, %c0_12, %c0_13], %15 {strides = array<i32>} : memref<1x16x64xf32, #tpu.memory_space<vmem>>, vector<1x16x64xf32>,
    return
  }
  func.func @transform_0(%arg0: i32, %arg1: i32) -> (i32, i32, i32) {
    %c0_i32 = arith.constant 0 : i32
    %c0_i32_0 = arith.constant 0 : i32
    return %arg0, %arg1, %c0_i32 : i32, i32, i32
  }
  func.func @transform_1(%arg0: i32, %arg1: i32) -> (i32, i32, i32, i32) {
    %c0_i32 = arith.constant 0 : i32
    %c0_i32_0 = arith.constant 0 : i32
    %c0_i32_1 = arith.constant 0 : i32
    return %arg0, %arg1, %c0_i32, %c0_i32_0 : i32, i32, i32, i32
  }
  func.func @transform_2(%arg0: i32, %arg1: i32) -> (i32, i32) {
    %c0_i32 = arith.constant 0 : i32
    %c0_i32_0 = arith.constant 0 : i32
    %c0_i32_1 = arith.constant 0 : i32
    return %c0_i32, %c0_i32_0 : i32, i32
  }
  func.func @transform_3(%arg0: i32, %arg1: i32) -> (i32, i32, i32) {
    %c0_i32 = arith.constant 0 : i32
    %c0_i32_0 = arith.constant 0 : i32
    return %arg0, %arg1, %c0_i32 : i32, i32, i32
  }
}

</mosaic_0001>

<bundles_post_ra>
// kernel: upsample_net_forward.1
= control target key start
LH: loop header
LB: loop body
LE: loop exit
PB: predicated region body
PF: predicated region fallthrough
CT: control target
= control target key end

     0   :  { %s672_s12 = smov 0   ;;  %s674_s13 = smov 0   ;;  %s778_s0 = inlined_call_operand.vmem [shape: f32[2,32,32], index: 0, kind: input, shape index: {}]   ;;  %s779_s1 = inlined_call_operand.vmem [shape: f32[2,2,2,32], index: 1, kind: input, shape index: {}]   ;;  %s780_s2 = inlined_call_operand.vmem [shape: f32[96,64], index: 2, kind: input, shape index: {}]   ;;  %s781_s3 = inlined_call_operand.vmem [shape: f32[2,32,64], index: 3, kind: output, shape index: {}]  }
   0x1   :  { %s676_s14 = smov 0   ;;  %s678_s15 = smov 0  }
   0x2   :  { %s680_s16 = smov 0  }
   0x3 LB: > { %s22_s17 = sadd.s32 1, %s640_s14  ;;  %s25_s18 = sadd.s32 1, %s644_s15  ;;  %s648_s16 = sphi %s680_s16, %s13_s16   ;;  %s644_s15 = sphi %s678_s15, %s785_s15   ;;  %s640_s14 = sphi %s676_s14, %s784_s14   ;;  %s636_s13 = sphi %s674_s13, %s783_s13   ;;  %s632_s12 = sphi %s672_s12, %s782_s12  }
   0x4   : > { %p23_p0 = scmp.ge.s32.totalorder %s22_s17, 2  ;;  %p490_p1 = scmp.ge.s32.totalorder %s648_s16, 1 }
   0x5   : > { %p173_p2 = scmp.lt.s32.totalorder %s648_s16, 5 }
   0x6   : > { %s787_s17 = smov (%p23_p0, %s22_s17), 0  ;;  %s789_s18 = smov (!%p23_p0, %s25_s18), %s644_s15 }
   0x7   : > { %p174_p3 = pnand %p490_p1, %p173_p2  ;;  %p27_p4 = scmp.ge.s32.totalorder %s789_s18, 2 }
   0x8   : > { %s491_s19 = sshll.u32 (!%p174_p3), %s632_s12, 1  ;;  %p214_p5 = scmp.lt.s32.totalorder (!%p174_p3), %s636_s13, 1  ;;  %v282_v0 = vld [vmem:[%s780_s2] sm:$0xff] (!%p174_p3)  ;;  %v283_v1 = vld [vmem:[%s780_s2 + $0x8] sm:$0xff] (!%p174_p3)  ;;  %v284_v3 = vld [vmem:[%s780_s2 + $0x10] sm:$0xff] (!%p174_p3)  ;;  %vm253_vm0 = vcmask (!%p174_p3), 1046528  }
   0x9   : > { %s791_s18 = smov (%p27_p4, %s789_s18), 0  ;;  %177 = sbr.rel (%p174_p3) target bundleno = 360 (0x168), region = 32 }
   0xa   : > { %p216_p6 = scmp.lt.s32.totalorder (!%p174_p3), %s491_s19, 3  ;;  %v544_v2 = vpack.c.bf16 (!%p174_p3), %v283_v1, %v282_v0  ;;  %v285_v4 = vld [vmem:[%s780_s2 + $0x18] sm:$0xff] (!%p174_p3)  ;;  %v286_v6 = vld [vmem:[%s780_s2 + $0x20] sm:$0xff] (!%p174_p3)  ;;  %v287_v7 = vld [vmem:[%s780_s2 + $0x28] sm:$0xff] (!%p174_p3)  ;;  %p225_p7 = scmp.lt.s32.totalorder (!%p174_p3), %s632_s12, 1  ;;  %vm247_vm1 = vcmask (!%p174_p3), 1040384  }
   0xb   : > { %v548_v5 = vpack.c.bf16 (!%p174_p3), %v285_v4, %v284_v3  ;;  %v552_v8 = vpack.c.bf16 (!%p174_p3), %v287_v7, %v286_v6  ;;  %v288_v9 = vld [vmem:[%s780_s2 + $0x30] sm:$0xff] (!%p174_p3)  ;;  %v289_v10 = vld [vmem:[%s780_s2 + $0x38] sm:$0xff] (!%p174_p3)  ;;  %v290_v17 = vld [vmem:[%s780_s2 + $0x40] sm:$0xff] (!%p174_p3)  ;;  %s650_s4 = smov (!%p174_p3), 64   ;;  %s651_s10 = smov (!%p174_p3), 32   ;;  %vm276_vm2 = vcmask (!%p174_p3), 261120  }
   0xc   : > { %545 = vmatprep.subr.bf16.mxu0 (!%p174_p3), %v544_v2  ;;  %v556_v15 = vpack.c.bf16 (!%p174_p3), %v289_v10, %v288_v9  ;;  %v291_v18 = vld [vmem:[%s780_s2 + $0x48] sm:$0xff] (!%p174_p3)  ;;  %v292_v26 = vld [vmem:[%s780_s2 + $0x50] sm:$0xff] (!%p174_p3)  ;;  %v293_v27 = vld [vmem:[%s780_s2 + $0x58] sm:$0xff] (!%p174_p3)  ;;  %vm279_vm3 = vcmask (!%p174_p3), 523264   ;;  %vm294_vm4 = vcmask (!%p174_p3), 785408  }
   0xd   : > { %547 = vmatpush3.bf16.msra.mxu0 (!%p174_p3), %v544_v2  ;;  %v560_v23 = vpack.c.bf16 (!%p174_p3), %v291_v18, %v290_v17  ;;  %v564_v30 = vpack.c.bf16 (!%p174_p3), %v293_v27, %v292_v26 }
   0xe   : > { %549 = vmatprep.subr.bf16.mxu0 (!%p174_p3), %v548_v5 }
  0x10   : > { %s793_s13 = smov (!%p214_p5, %s636_s13), 1  ;;  %s795_s19 = smov (!%p216_p6, %s491_s19), 3 }
  0x11   : > { %s492_s5 = sshll.u32 %s793_s13, 2  ;;  %s797_s12 = smov (!%p225_p7, %s632_s12), 1  ;;  %551 = vmatpush3.bf16.msra.mxu0 %v548_v5 }
  0x12   : > { %s724_s6 = sadd.s32 %s492_s5, %s795_s19  ;;  %s494_s19 = sshll.u32 %s793_s13, 1  ;;  %553 = vmatprep.subr.bf16.mxu0 %v552_v8 }
  0x13   : > { %s493_s7 = sshll.u32 %s724_s6, 3  ;;  %s228_s23 = sadd.s32 %s494_s19, %s797_s12 }
  0x14   : > { %s221_s22 = scalar_lea.vmem %s778_s0, %s493_s7  ;;  %s495_s13 = sshll.u32 %s228_s23, 1 }
  0x15   : > { %v241_v11 = vld [vmem:[%s221_s22] sm:$0xff]  ;;  %v242_v12 = vld [vmem:[%s221_s22 + $0x8] sm:$0xff]  ;;  %s230_s30 = scalar_lea.vmem %s779_s1, %s495_s13  ;;  %555 = vmatpush3.bf16.msra.mxu0 %v552_v8  ;;  %s239_s21 = scalar_lea.vmem %s781_s3, %s493_s7 }
  0x16   : > { %v254_v13 = vrot.slane %v241_v11, 1  ;;  %v255_v14 = vrot.slane %v242_v12, 1  ;;  %v248_v16 = vrot.slane %v241_v11, 7  ;;  %v249_v20 = vrot.slane %v242_v12, 7  ;;  %v243_v21 = vld [vmem:[%s230_s30] sm:$0x1]  ;;  %557 = vmatprep.subr.bf16.mxu0 %v556_v15 }
  0x17   : > { %v244_v22 = vld [vmem:[%s230_s30 + $0x1] sm:$0x1] }
  0x18   : > { %v256_v19 = vsel %vm253_vm0, %v254_v13, %v255_v14  ;;  %v252_v24 = vsel %vm247_vm1, %v243_v21, %v248_v16  ;;  %v259_v25 = vrot.slane %v244_v22, 1  ;;  %v250_v28 = vsel %vm247_vm1, %v248_v16, %v249_v20 }
  0x19   : > { %270 = vrot.lane.b32.xlu1 %v256_v19, %s650_s4  ;;  %263 = vrot.lane.b32.xlu0 %v252_v24, %s651_s10 }
  0x1a   : > { %v261_v29 = vsel %vm253_vm0, %v255_v14, %v259_v25  ;;  %559 = vmatpush3.bf16.msra.mxu0 %v556_v15 }
  0x1b   : > { %561 = vmatprep.subr.bf16.mxu0 %v560_v23 }
  0x1d   : > { %272 = vrot.lane.b32.xlu1 %v261_v29, %s650_s4  ;;  %265 = vrot.lane.b32.xlu0 %v250_v28, %s651_s10 }
  0x1e   : > { %563 = vmatpush3.bf16.msra.mxu0 %v560_v23 }
  0x1f   : > { %565 = vmatprep.subr.bf16.mxu0 %v564_v30 }
  0x22   : > { %567 = vmatpush3.bf16.msra.mxu0 %v564_v30 }
  0x8b   : > { %v271_v31 = vpop.permute.xlu1 %270  ;;  %v264_v32 = vpop.permute.xlu0 %263 }
  0x8c   : > { %v277_v33 = vsel %vm276_vm2, %v241_v11, %v264_v32 }
  0x8d   : > { %v280_v34 = vsel %vm279_vm3, %v277_v33, %v271_v31 }
  0x8e   : > { %541 = vmatprep.mubr.msk.f32.mxu0 %vm294_vm4, %v280_v34 }
  0x8f   : > { %v273_v35 = vpop.permute.xlu1 %272  ;;  %v266_v36 = vpop.permute.xlu0 %265 }
  0x90   : > { %v278_v37 = vsel %vm276_vm2, %v242_v12, %v266_v36 }
  0x91   : > { %v281_v38 = vsel %vm279_vm3, %v278_v37, %v273_v35 }
  0x92   : > { %542 = vmatmul.mubr.msk.f32.vlgmr.msra.gmra.mrb[0].mxu0 %vm294_vm4, %v281_v38 }
 0x165   : > { %v543_v39 = vpop.f32.mrb[0].mxu0 }
 0x166   : > { %377 = vst.msk [vmem:[%s239_s21 + $0x8] sm:$0xff] %vm279_vm3, %v543_v39  ;;  %v367_v40 = vpop.f32.mrb[1].mxu0 }
 0x167   : > { %376 = vst.msk [vmem:[%s239_s21] sm:$0xff] %vm279_vm3, %v367_v40 }
 0x168 PF: > { %s13_s16 = sadd.s32 1, %s648_s16   ;;  %s782_s12 = smov %s640_s14 }
 0x169   : > { %p10_p8 = scmp.ge.s32.totalorder %s13_s16, 6   ;;  %s783_s13 = smov %s644_s15 }
 0x16a   : > { %s784_s14 = smov %s787_s17  ;;  %s785_s15 = smov %s791_s18 }
 0x16b   :  { %12 = sbr.rel (!%p10_p8) target bundleno = 3 (0x3), region = 65 }

</bundles_post_ra>
